<compile_context>
chip_gen: v5e
topology: v5e:2x2
jax: 0.10.0
libtpu: 0.0.40
codegen_flags: <defaults>
</compile_context>

<pallas_src>
import numpy as np
import jax
import jax.numpy as jnp
from jax.experimental import pallas as pl
from jax.experimental.pallas import tpu as pltpu

CLIP_EXP_THR = float(np.log(np.finfo(np.float32).max) - 1e-4)  # torch f32 default
SOFTPLUS_THRESHOLD = 20.0  # PyTorch nn.Softplus default threshold

_LANES = 128
_SUBLANES = 8
_STEP_BYTES_TARGET = 2 * 1024 * 1024   # ~2 MiB HBM traffic per grid step (good v5e-v7x)
_VMEM_TILE_BUDGET = 12 * 1024 * 1024   # double-buffered tiles; < v5e's 16 MiB scoped default


def _round_up(x, m):
    return ((x + m - 1) // m) * m


def _round_down(x, m):
    return (x // m) * m


def _pack_factor(n_output):
    """How many n_output-wide rows fit in one 128-lane vector row (0 = not packable)."""
    if 0 < n_output < _LANES and _LANES % n_output == 0:
        return _LANES // n_output
    return 0


def _choose_tile(n_rows, bytes_per_row, tile_unit, resident_bytes=0):
    """Pick a row tile for the batch axis.

    Targets ~_STEP_BYTES_TARGET of HBM traffic per grid step (amortizes the
    ~0.35 us fixed per-step overhead), keeps the double-buffered VMEM footprint
    under _VMEM_TILE_BUDGET, never exceeds the array extent, and keeps >= 2
    grid steps so a v7x megacore can shard the 'parallel' axis across both
    TensorCores.  Returned tile is a multiple of `tile_unit` (or the full
    array when n_rows <= tile_unit, satisfying layout rules via full dims).
    """
    if n_rows <= tile_unit:
        return n_rows                                       # single full block
    bpr = max(bytes_per_row, 1)
    tm = max(tile_unit, _round_down(_STEP_BYTES_TARGET // bpr, tile_unit))
    vmem_rows = max(tile_unit, (_VMEM_TILE_BUDGET - resident_bytes) // (2 * bpr))
    tm = min(tm, max(tile_unit, _round_down(vmem_rows, tile_unit)))
    tm = min(tm, _round_down(n_rows, tile_unit))            # block never larger than array
    tm = min(tm, max(tile_unit, _round_up(pl.cdiv(n_rows, 2), tile_unit)))  # >= 2 steps
    return max(tile_unit, tm)


def _clip_softplus_nan(v):
    """clip -> softplus (PyTorch threshold semantics) -> nan_to_num (nan -> 0)."""
    v = jnp.clip(v, -CLIP_EXP_THR, CLIP_EXP_THR)
    safe = jnp.minimum(v, SOFTPLUS_THRESHOLD)               # keep unused exp branch finite
    v = jnp.where(v > SOFTPLUS_THRESHOLD, v, jnp.log1p(jnp.exp(safe)))
    return jnp.where(jnp.isnan(v), jnp.zeros_like(v), v)


# --------------------------------- kernels ----------------------------------

def _sample_feature_kernel(x_ref, w_ref, b_ref, o_ref):
    # x @ W + b on the MXU, elementwise chain on VPU/EUP.  Padded rows of a
    # partial last block carry garbage through the chain; clip bounds the exp
    # argument and Pallas discards those rows, so no masking is needed.
    v = jnp.dot(x_ref[...], w_ref[...], preferred_element_type=jnp.float32)
    v = v + b_ref[...]
    o_ref[...] = _clip_softplus_nan(v).astype(o_ref.dtype)


def _sample_feature_packed_kernel(x_ref, w_ref, b_ref, o_ref):
    # Lane-dense output: relayout the (tm, n_out) matmul result into the
    # (tm*n_out/128, 128) output slab BEFORE the elementwise chain, so
    # clip/exp/log1p run on fully-occupied vregs (128/n_out fewer VPU/EUP ops)
    # and the store is a full-width vst instead of a masked vst.msk.
    v = jnp.dot(x_ref[...], w_ref[...], preferred_element_type=jnp.float32)
    v = v + b_ref[...]
    v = v.reshape(o_ref.shape)      # row-major-preserving relayout (XLU/VMEM copy)
    o_ref[...] = _clip_softplus_nan(v).astype(o_ref.dtype)


def _broadcast_row_kernel(row_ref, o_ref):
    # 'feature' mode: activation already applied in the wrapper; the body is a
    # pure broadcast + store, so the binding slot is cleanly vst / writeback DMA.
    o_ref[...] = jnp.broadcast_to(row_ref[...], o_ref.shape)


# --------------------------------- wrapper ----------------------------------

def var_encoder_forward(x, *, mode, weight=None, bias=None, var_param=None, exp_clip=True):
    """Pallas implementation of VarEncoder.forward.

    x : (n_samples, n_input) float32
    weight : (n_input, n_output)   (mode='sample_feature'; transposed vs torch)
    bias   : (1, n_output)
    var_param : (1, n_output)      (mode='feature')
    """
    assert exp_clip, "only the default exp_clip=True path is implemented"
    # TODO(synk): optional bf16 x/W input path (pure HBM-bandwidth win) is not
    # emitted, to preserve f32 parity with the torch reference.
    n = x.shape[0]
    itemsize = x.dtype.itemsize
    params = pltpu.CompilerParams(dimension_semantics=("parallel",))

    if mode == "sample_feature":
        n_input = x.shape[1]
        n_output = weight.shape[1]
        bytes_per_row = itemsize * (n_input + n_output)              # x in + out back
        resident = itemsize * 2 * (n_input * n_output + n_output)    # dbl-buffered W, b
        pack = _pack_factor(n_output)

        if pack and n % pack == 0:
            rows_total = n // pack
            tm = _choose_tile(n, bytes_per_row, _SUBLANES * pack, resident)
            try:
                out = pl.pallas_call(
                    _sample_feature_packed_kernel,
                    out_shape=jax.ShapeDtypeStruct((rows_total, _LANES), x.dtype),
                    grid=(pl.cdiv(n, tm),),
                    in_specs=[
                        pl.BlockSpec((tm, n_input), lambda i: (i, 0)),
                        pl.BlockSpec((n_input, n_output), lambda i: (0, 0)),
                        pl.BlockSpec((1, n_output), lambda i: (0, 0)),
                    ],
                    out_specs=pl.BlockSpec((tm * n_output // _LANES, _LANES),
                                           lambda i: (i, 0)),
                    compiler_params=params,
                )(x, weight, bias)
                return out.reshape(n, n_output)
            except Exception:
                # Fallback if Mosaic rejects the in-kernel (tm, n_out) ->
                # (tm*n_out/128, 128) relayout on this jax/libtpu version.
                pass

        tm = _choose_tile(n, bytes_per_row, _SUBLANES, resident)
        return pl.pallas_call(
            _sample_feature_kernel,
            out_shape=jax.ShapeDtypeStruct((n, n_output), x.dtype),
            grid=(pl.cdiv(n, tm),),
            in_specs=[
                pl.BlockSpec((tm, n_input), lambda i: (i, 0)),
                pl.BlockSpec((n_input, n_output), lambda i: (0, 0)),
                pl.BlockSpec((1, n_output), lambda i: (0, 0)),
            ],
            out_specs=pl.BlockSpec((tm, n_output), lambda i: (i, 0)),
            compiler_params=params,
        )(x, weight, bias)

    elif mode == "feature":
        n_output = var_param.shape[1]
        # Hoist the (1, n_output) activation out of the per-step kernel body.
        act = _clip_softplus_nan(var_param.astype(jnp.float32)).astype(x.dtype)
        pack = _pack_factor(n_output)

        if pack and n % pack == 0:
            rows_total = n // pack
            row = jnp.tile(act, (1, pack))                  # (1, 128) lane-dense row
            tr = _choose_tile(rows_total, itemsize * _LANES, _SUBLANES)
            out = pl.pallas_call(
                _broadcast_row_kernel,
                out_shape=jax.ShapeDtypeStruct((rows_total, _LANES), x.dtype),
                grid=(pl.cdiv(rows_total, tr),),
                in_specs=[pl.BlockSpec((1, _LANES), lambda i: (0, 0))],
                out_specs=pl.BlockSpec((tr, _LANES), lambda i: (i, 0)),
                compiler_params=params,
            )(row)
            return out.reshape(n, n_output)

        tm = _choose_tile(n, itemsize * n_output, _SUBLANES)
        return pl.pallas_call(
            _broadcast_row_kernel,
            out_shape=jax.ShapeDtypeStruct((n, n_output), x.dtype),
            grid=(pl.cdiv(n, tm),),
            in_specs=[pl.BlockSpec((1, n_output), lambda i: (0, 0))],
            out_specs=pl.BlockSpec((tm, n_output), lambda i: (i, 0)),
            compiler_params=params,
        )(act)

    raise ValueError("Mode not recognised.")


# -------------------------- reference & self-check ---------------------------

def _reference_forward(x, *, mode, weight=None, bias=None, var_param=None):
    """Pure-JAX reference (matmul at highest precision) for correctness checks."""
    if mode == "sample_feature":
        v = jnp.dot(x, weight, precision=jax.lax.Precision.HIGHEST) + bias
    else:
        v = jnp.broadcast_to(var_param, (x.shape[0], var_param.shape[1]))
    v = jnp.clip(v, -CLIP_EXP_THR, CLIP_EXP_THR)
    v = jnp.where(v > SOFTPLUS_THRESHOLD, v,
                  jnp.log1p(jnp.exp(jnp.minimum(v, SOFTPLUS_THRESHOLD))))
    return jnp.nan_to_num(v)


def _check(x, weight, bias, var_param):
    out_sf = jax.block_until_ready(
        var_encoder_forward(x, mode="sample_feature", weight=weight, bias=bias))
    ref_sf = _reference_forward(x, mode="sample_feature", weight=weight, bias=bias)
    # Loose tolerance accounts for TPU matmul precision (MXU bf16 passes) vs HIGHEST.
    np.testing.assert_allclose(np.asarray(out_sf), np.asarray(ref_sf),
                               rtol=5e-3, atol=1e-3)

    out_f = jax.block_until_ready(
        var_encoder_forward(x, mode="feature", var_param=var_param))
    ref_f = _reference_forward(x, mode="feature", var_param=var_param)
    np.testing.assert_allclose(np.asarray(out_f), np.asarray(ref_f),
                               rtol=1e-6, atol=1e-6)

    assert out_sf.shape == ref_sf.shape and out_f.shape == ref_f.shape
    assert bool(jnp.all(out_sf > 0)) and bool(jnp.all(out_f > 0))  # strictly positive variance


if __name__ == "__main__":
    key = jax.random.PRNGKey(0)
    k_x, k_w, k_b, k_p, k_x2, k_x3 = jax.random.split(key, 6)

    n_input, n_output = 32, 16

    # Deterministic synthetic parameters (shapes per VarEncoder.__init__).
    weight = 0.05 * jax.random.normal(k_w, (n_input, n_output), dtype=jnp.float32)
    bias = 0.01 * jax.random.normal(k_b, (1, n_output), dtype=jnp.float32)
    var_param = jax.random.normal(k_p, (1, n_output), dtype=jnp.float32)

    # Small batch: single full block, packed slab of 1 row in both modes.
    x_small = jax.random.normal(k_x, (8, n_input), dtype=jnp.float32)
    _check(x_small, weight, bias, var_param)

    # Larger batch: multi-step grid (>= 2 steps for megacore), partial last
    # block, lane-dense packed output slab in both modes.
    x_big = jax.random.normal(k_x2, (520, n_input), dtype=jnp.float32)
    _check(x_big, weight, bias, var_param)

    # Batch not a multiple of the 128/n_output packing factor: unpacked fallback.
    x_odd = jax.random.normal(k_x3, (12, n_input), dtype=jnp.float32)
    _check(x_odd, weight, bias, var_param)

    print("KERNEL_OK")
</pallas_src>

<mosaic_0001>
module attributes {stable_mosaic.version = 11 : i64} {
  func.func @_sample_feature_packed_kernel(%arg0: i32, %arg1: memref<8x32xf32, #tpu.memory_space<vmem>>, %arg2: memref<32x16xf32, #tpu.memory_space<vmem>>, %arg3: memref<1x16xf32, #tpu.memory_space<vmem>>, %arg4: memref<1x128xf32, #tpu.memory_space<vmem>>) attributes {dimension_semantics = [#tpu.dimension_semantics<parallel>], iteration_bounds = array<i64: 1>, scalar_prefetch = 0 : i64, scratch_operands = 0 : i64, tpu.core_type = #tpu.core_type<tc>, window_params = [{transform_indices = @transform_0, window_bounds = array<i64: 8, 32>}, {pipeline_mode = #tpu.pipeline_mode<synchronous>, transform_indices = @transform_1, window_bounds = array<i64: 32, 16>}, {pipeline_mode = #tpu.pipeline_mode<synchronous>, transform_indices = @transform_2, window_bounds = array<i64: 1, 16>}, {transform_indices = @transform_3, window_bounds = array<i64: 1, 128>}]} {
    %c0 = arith.constant 0 : index
    %c0_0 = arith.constant 0 : index
    %0 = vector.load %arg1[%c0, %c0_0] : memref<8x32xf32, #tpu.memory_space<vmem>>, vector<8x32xf32>
    %c0_1 = arith.constant 0 : index
    %c0_2 = arith.constant 0 : index
    %1 = vector.load %arg2[%c0_1, %c0_2] : memref<32x16xf32, #tpu.memory_space<vmem>>, vector<32x16xf32>
    %cst = arith.constant dense<0.000000e+00> : vector<8x16xf32>
    %2 = tpu.matmul %0, %1, %cst {dimension_numbers = #tpu.dot_dimension_numbers<[1], [0], [0], [1], [0, 0, 1, 1], [], []>} : vector<8x32xf32>, vector<32x16xf32>, vector<8x16xf32> -> vector<8x16xf32>
    %c0_3 = arith.constant 0 : index
    %c0_4 = arith.constant 0 : index
    %3 = vector.load %arg3[%c0_3, %c0_4] : memref<1x16xf32, #tpu.memory_space<vmem>>, vector<1x16xf32>
    %4 = vector.broadcast %3 : vector<1x16xf32> to vector<8x16xf32>
    %5 = arith.addf %2, %4 : vector<8x16xf32>
    %6 = vector.shape_cast %5 : vector<8x16xf32> to vector<1x128xf32>
    %cst_5 = arith.constant -88.7227402 : f32
    %cst_6 = arith.constant 88.7227402 : f32
    %7 = vector.broadcast %cst_5 : f32 to vector<1x128xf32>
    %8 = arith.maximumf %7, %6 : vector<1x128xf32>
    %9 = vector.broadcast %cst_6 : f32 to vector<1x128xf32>
    %10 = arith.minimumf %9, %8 : vector<1x128xf32>
    %cst_7 = arith.constant 2.000000e+01 : f32
    %11 = vector.broadcast %cst_7 : f32 to vector<1x128xf32>
    %12 = arith.minimumf %10, %11 : vector<1x128xf32>
    %cst_8 = arith.constant 2.000000e+01 : f32
    %13 = vector.broadcast %cst_8 : f32 to vector<1x128xf32>
    %14 = arith.cmpf ogt, %10, %13 : vector<1x128xf32>
    %15 = math.exp %12 : vector<1x128xf32>
    %16 = math.log1p %15 : vector<1x128xf32>
    %17 = arith.select %14, %10, %16 : vector<1x128xi1>, vector<1x128xf32>
    %18 = arith.cmpf one, %17, %17 : vector<1x128xf32>
    %cst_9 = arith.constant 0.000000e+00 : f32
    %19 = vector.broadcast %cst_9 : f32 to vector<1x128xf32>
    %20 = arith.select %18, %19, %17 : vector<1x128xi1>, vector<1x128xf32>
    %c0_10 = arith.constant 0 : index
    %c0_11 = arith.constant 0 : index
    %21 = vector.load %arg4[%c0_10, %c0_11] : memref<1x128xf32, #tpu.memory_space<vmem>>, vector<1x128xf32>
    tpu.vector_store %arg4[%c0_10, %c0_11], %20 {strides = array<i32>} : memref<1x128xf32, #tpu.memory_space<vmem>>, vector<1x128xf32>,
    return
  }
  func.func @transform_0(%arg0: i32) -> (i32, i32) {
    %c0_i32 = arith.constant 0 : i32
    %c0_i32_0 = arith.constant 0 : i32
    return %arg0, %c0_i32 : i32, i32
  }
  func.func @transform_1(%arg0: i32) -> (i32, i32) {
    %c0_i32 = arith.constant 0 : i32
    %c0_i32_0 = arith.constant 0 : i32
    %c0_i32_1 = arith.constant 0 : i32
    return %c0_i32, %c0_i32_0 : i32, i32
  }
  func.func @transform_2(%arg0: i32) -> (i32, i32) {
    %c0_i32 = arith.constant 0 : i32
    %c0_i32_0 = arith.constant 0 : i32
    %c0_i32_1 = arith.constant 0 : i32
    return %c0_i32, %c0_i32_0 : i32, i32
  }
  func.func @transform_3(%arg0: i32) -> (i32, i32) {
    %c0_i32 = arith.constant 0 : i32
    %c0_i32_0 = arith.constant 0 : i32
    return %arg0, %c0_i32 : i32, i32
  }
}

module attributes {stable_mosaic.version = 11 : i64} {
  func.func @_sample_feature_kernel(%arg0: i32, %arg1: memref<8x32xf32, #tpu.memory_space<vmem>>, %arg2: memref<32x16xf32, #tpu.memory_space<vmem>>, %arg3: memref<1x16xf32, #tpu.memory_space<vmem>>, %arg4: memref<8x16xf32, #tpu.memory_space<vmem>>) attributes {dimension_semantics = [#tpu.dimension_semantics<parallel>], iteration_bounds = array<i64: 1>, scalar_prefetch = 0 : i64, scratch_operands = 0 : i64, tpu.core_type = #tpu.core_type<tc>, window_params = [{transform_indices = @transform_0, window_bounds = array<i64: 8, 32>}, {pipeline_mode = #tpu.pipeline_mode<synchronous>, transform_indices = @transform_1, window_bounds = array<i64: 32, 16>}, {pipeline_mode = #tpu.pipeline_mode<synchronous>, transform_indices = @transform_2, window_bounds = array<i64: 1, 16>}, {transform_indices = @transform_3, window_bounds = array<i64: 8, 16>}]} {
    %c0 = arith.constant 0 : index
    %c0_0 = arith.constant 0 : index
    %0 = vector.load %arg1[%c0, %c0_0] : memref<8x32xf32, #tpu.memory_space<vmem>>, vector<8x32xf32>
    %c0_1 = arith.constant 0 : index
    %c0_2 = arith.constant 0 : index
    %1 = vector.load %arg2[%c0_1, %c0_2] : memref<32x16xf32, #tpu.memory_space<vmem>>, vector<32x16xf32>
    %cst = arith.constant dense<0.000000e+00> : vector<8x16xf32>
    %2 = tpu.matmul %0, %1, %cst {dimension_numbers = #tpu.dot_dimension_numbers<[1], [0], [0], [1], [0, 0, 1, 1], [], []>} : vector<8x32xf32>, vector<32x16xf32>, vector<8x16xf32> -> vector<8x16xf32>
    %c0_3 = arith.constant 0 : index
    %c0_4 = arith.constant 0 : index
    %3 = vector.load %arg3[%c0_3, %c0_4] : memref<1x16xf32, #tpu.memory_space<vmem>>, vector<1x16xf32>
    %4 = vector.broadcast %3 : vector<1x16xf32> to vector<8x16xf32>
    %5 = arith.addf %2, %4 : vector<8x16xf32>
    %cst_5 = arith.constant -88.7227402 : f32
    %cst_6 = arith.constant 88.7227402 : f32
    %6 = vector.broadcast %cst_5 : f32 to vector<8x16xf32>
    %7 = arith.maximumf %6, %5 : vector<8x16xf32>
    %8 = vector.broadcast %cst_6 : f32 to vector<8x16xf32>
    %9 = arith.minimumf %8, %7 : vector<8x16xf32>
    %cst_7 = arith.constant 2.000000e+01 : f32
    %10 = vector.broadcast %cst_7 : f32 to vector<8x16xf32>
    %11 = arith.minimumf %9, %10 : vector<8x16xf32>
    %cst_8 = arith.constant 2.000000e+01 : f32
    %12 = vector.broadcast %cst_8 : f32 to vector<8x16xf32>
    %13 = arith.cmpf ogt, %9, %12 : vector<8x16xf32>
    %14 = math.exp %11 : vector<8x16xf32>
    %15 = math.log1p %14 : vector<8x16xf32>
    %16 = arith.select %13, %9, %15 : vector<8x16xi1>, vector<8x16xf32>
    %17 = arith.cmpf one, %16, %16 : vector<8x16xf32>
    %cst_9 = arith.constant 0.000000e+00 : f32
    %18 = vector.broadcast %cst_9 : f32 to vector<8x16xf32>
    %19 = arith.select %17, %18, %16 : vector<8x16xi1>, vector<8x16xf32>
    %c0_10 = arith.constant 0 : index
    %c0_11 = arith.constant 0 : index
    %20 = vector.load %arg4[%c0_10, %c0_11] : memref<8x16xf32, #tpu.memory_space<vmem>>, vector<8x16xf32>
    tpu.vector_store %arg4[%c0_10, %c0_11], %19 {strides = array<i32>} : memref<8x16xf32, #tpu.memory_space<vmem>>, vector<8x16xf32>,
    return
  }
  func.func @transform_0(%arg0: i32) -> (i32, i32) {
    %c0_i32 = arith.constant 0 : i32
    %c0_i32_0 = arith.constant 0 : i32
    return %arg0, %c0_i32 : i32, i32
  }
  func.func @transform_1(%arg0: i32) -> (i32, i32) {
    %c0_i32 = arith.constant 0 : i32
    %c0_i32_0 = arith.constant 0 : i32
    %c0_i32_1 = arith.constant 0 : i32
    return %c0_i32, %c0_i32_0 : i32, i32
  }
  func.func @transform_2(%arg0: i32) -> (i32, i32) {
    %c0_i32 = arith.constant 0 : i32
    %c0_i32_0 = arith.constant 0 : i32
    %c0_i32_1 = arith.constant 0 : i32
    return %c0_i32, %c0_i32_0 : i32, i32
  }
  func.func @transform_3(%arg0: i32) -> (i32, i32) {
    %c0_i32 = arith.constant 0 : i32
    %c0_i32_0 = arith.constant 0 : i32
    return %arg0, %c0_i32 : i32, i32
  }
}

</mosaic_0001>

<bundles_post_ra>
// kernel: tpu_custom_call.1
= control target key start
LH: loop header
LB: loop body
LE: loop exit
PB: predicated region body
PF: predicated region fallthrough
CT: control target
= control target key end

     0   :  { %s160_s0 = inlined_call_operand.vmem [shape: f32[8,32], index: 0, kind: input, shape index: {}]   ;;  %s161_s1 = inlined_call_operand.vmem [shape: f32[32,16], index: 1, kind: input, shape index: {}]   ;;  %s162_s2 = inlined_call_operand.vmem [shape: f32[1,16], index: 2, kind: input, shape index: {}]   ;;  %s163_s3 = inlined_call_operand.hbm [shape: f32[8,16], index: 3, kind: output, shape index: {}]  }
   0x1   :  { %v19_v0 = vld [vmem:[%s161_s1 + $0x18] sm:$0xff]  ;;  %v18_v1 = vld [vmem:[%s161_s1 + $0x10] sm:$0xff]  ;;  %v17_v2 = vld [vmem:[%s161_s1 + $0x8] sm:$0xff] }
   0x2   :  { %40 = vmatpush.msra.mxu0 %v19_v0 }
   0x3   :  { %8 = vsyncpa [#allocation3], 0  ;;  %v16_v3 = vld [vmem:[%s161_s1] sm:$0xff]  ;;  %vm24_vm0 = vcmask 261120   ;;  %s75_s25 = sshll.u32 %s163_s3, 4  ;;  %vm66_vm3 = vcmask 130048   ;;  %s76_s25 = int_to_ptr.hbm [resolvable:$true] %s75_s25 }
   0x4   :  { %41 = vmatpush.msra.mxu0 %v18_v1  ;;  %v15_v4 = vld [vmem:[%s160_s0] sm:$0xff]  ;;  %s118_s0 = smov [#allocation2]  }
   0x5   :  { %v87_v5 = vld [vmem:[%s162_s2] ss:$0 sm:$0xff]  ;;  %s73_s1 = sshll.u32 %s118_s0, 4  ;;  %s74_s1 = int_to_ptr.vmem [resolvable:$true] %s73_s1 }
   0x6   :  { %42 = vmatpush.msra.mxu0 %v17_v2 }
   0x8   :  { %43 = vmatpush.msra.mxu0 %v16_v3 }
   0x9   :  { %84 = vmatmul.msk.f32.vlgmr.msra.gmra.mxu0 %vm24_vm0, %v15_v4 }
  0x86   :  { %v45_v6 = vpop.f32.mrf.mxu0 }
  0x87   :  { %v46_v7 = vadd.f32 %v87_v5, %v45_v6 }
  0x89   :  { %v85_v8 = vclamps-f32 %v46_v7, 88.72274 }
  0x8b   :  { %v50_v9 = vmin.f32 %v85_v8, 20.0  ;;  %vm51_vm2 = vcmp.gt.f32.partialorder %v85_v8, 20.0 }
  0x8d   :  { %v52_v10 = vmul.f32 1.442695, %v50_v9 }
  0x8f   :  { %88 = vpow2.f32 %v52_v10 }
  0x95   :  { %v89_v11 = vpop.eup %88 }
  0x96   :  { %v54_v12 = vadd.f32 1.0, %v89_v11  ;;  %v57_v13 = vmul.f32 -0.5, %v89_v11  ;;  %v60_v15 = vand.u32 2147483647, %v89_v11 }
  0x98   :  { %90 = vlog2.f32 %v54_v12  ;;  %v58_v14 = vadd.f32 1.0, %v57_v13  ;;  %vm61_vm1 = vcmp.lt.f32.partialorder %v60_v15, 0.0004427343 }
  0x9a   :  { %v59_v18 = vmul.f32 %v89_v11, %v58_v14 }
  0x9e   :  { %v91_v16 = vpop.eup %90 }
  0x9f   :  { %v56_v17 = vmul.f32 0.6931472, %v91_v16 }
  0xa1   :  { %v62_v19 = vsel %vm61_vm1, %v59_v18, %v56_v17 }
  0xa2   :  { %v63_v20 = vsel %vm51_vm2, %v85_v8, %v62_v19 }
  0xa3   :  { %vm64_vm4 = vcmp.ne.f32.partialorder %v63_v20, %v63_v20 }
  0xa4   :  { %v65_v21 = vsel %vm64_vm4, 0.0, %v63_v20 }
  0xa5   :  { %67 = vst.msk [vmem:[#allocation2] sm:$0xff] %vm66_vm3, %v65_v21 }
  0xa6   :  { %78 = dma.vmem_to_hbm [thread:$0]  %s74_s1, 128, %s76_s25, [#allocation3]  }
  0xa7   :  { %116 = dma.done.wait [#allocation3], 128  }
  0xa8   :  { %117 = vsyncadd [#allocation3], 4294967168 }
  0xa9   :  { %83 = vsyncpa [#allocation3], 1 }

</bundles_post_ra>
